<compile_context>
chip_gen: v7x
topology: tpu7x:2x2x1
jax: 0.10.0
libtpu: 0.0.40
codegen_flags: <defaults>
</compile_context>

<pallas_src>
import numpy as np
import jax
import jax.numpy as jnp
from jax.experimental import pallas as pl
from jax.experimental.pallas import tpu as pltpu


def get_sinusoid_encoding_table(maxseq_len: int, model_dim: int) -> jnp.ndarray:
    """Deterministic sinusoid table, identical math to the PyTorch module."""
    j = np.arange(model_dim)
    angle_rates = 1.0 / np.power(10000.0, 2.0 * (j // 2) / model_dim)
    table = np.arange(maxseq_len, dtype=np.float64)[:, None] * angle_rates[None, :]
    table[:, 0::2] = np.sin(table[:, 0::2])
    table[:, 1::2] = np.cos(table[:, 1::2])
    return jnp.asarray(table, dtype=jnp.float32)


def _add_pos_emb_kernel(x_ref, pe_ref, o_ref):
    # x_ref: (tile_rows, tile_sd); pe_ref: (1, tile_sd) -> sublane-broadcast add (VPU).
    o_ref[...] = (x_ref[...] + pe_ref[...]).astype(o_ref.dtype)


def _choose_tiles(n_rows: int, sd: int, itemsize: int,
                  *, target_block_bytes: int = 6 << 20,
                  min_block_bytes: int = 1 << 20):
    """Pick (tile_rows, tile_sd) for the (rows, S*D) flattened view.

    Legality: tile_rows % 8 == 0 or tile_rows == n_rows;
              tile_sd % 128 == 0 or tile_sd == sd.
    Goals:    every block <= target_block_bytes (VMEM-safe on v5e/v6e/v7x),
              >= 4 grid steps whenever blocks can stay >= min_block_bytes
              (DMA overlap + v7x two-core sharding), lane-dense blocks.
    """
    # Lane (S*D) axis first: cap it so an (<=8)-row block stays under target.
    rows_for_cap = min(n_rows, 8)
    lane_cap = max(128, (target_block_bytes // (rows_for_cap * itemsize)) // 128 * 128)
    tile_sd = sd if sd <= lane_cap else lane_cap      # lane_cap is a multiple of 128

    # Row (batch) axis: largest 8-aligned count keeping the block under target.
    if n_rows <= 8:
        tile_rows = n_rows
    else:
        rows_cap = max(8, target_block_bytes // (tile_sd * itemsize))
        tile_rows = min(n_rows, (rows_cap // 8) * 8)

    def steps(tr, ts):
        return pl.cdiv(n_rows, tr) * pl.cdiv(sd, ts)

    # Prefer >= 4 total grid steps (read of i+1 overlaps writeback of i-1, and
    # both v7x TensorCores get steps) but never shrink a block below
    # min_block_bytes: the ~0.35 us per-step cost must stay amortized.
    while steps(tile_rows, tile_sd) < 4:
        if tile_rows % 16 == 0 and (tile_rows // 2) * tile_sd * itemsize >= min_block_bytes:
            tile_rows //= 2
        elif tile_sd % 256 == 0 and tile_rows * (tile_sd // 2) * itemsize >= min_block_bytes:
            tile_sd //= 2
        else:
            break
    return tile_rows, tile_sd


def a_pos_emb_forward(x: jnp.ndarray, position_embedding: jnp.ndarray) -> jnp.ndarray:
    """out = x + position_embedding[:, :x.shape[1]]  (dropout = identity in eval)."""
    B, S, D = x.shape
    SD = S * D

    # Faithful PyTorch slicing (along the buffer's model_dim axis) + broadcast
    # resolution; only the S*D consumed elements are materialized / DMA'd.
    # NOTE: for bf16/fp16 x the add is done in x.dtype (PyTorch promotes the
    # f32 buffer); exact for f32 inputs.
    pe_slice = position_embedding[:, :S]
    pe_full = jnp.broadcast_to(pe_slice, (S, D)).astype(x.dtype)
    pe_flat = pe_full.reshape(1, SD)

    # Lane-dense 2-D view: last dim S*D, tiled in multiples of 128 -> unmasked
    # full-width vector stores instead of vst.msk partial stores.
    x_flat = x.reshape(B, SD)

    itemsize = x.dtype.itemsize
    tile_rows, tile_sd = _choose_tiles(B, SD, itemsize)
    n_rows = pl.cdiv(B, tile_rows)
    n_sd = pl.cdiv(SD, tile_sd)

    # Grid: SD chunks outer, rows inner -> pe block index (0, j) is constant
    # across the inner row sweep (not re-DMA'd between those steps).
    out_flat = pl.pallas_call(
        _add_pos_emb_kernel,
        out_shape=jax.ShapeDtypeStruct((B, SD), x.dtype),
        grid=(n_sd, n_rows),
        in_specs=[
            pl.BlockSpec((tile_rows, tile_sd), lambda j, i: (i, j)),
            pl.BlockSpec((1, tile_sd), lambda j, i: (0, j)),
        ],
        out_specs=pl.BlockSpec((tile_rows, tile_sd), lambda j, i: (i, j)),
        # Output block (i, j) depends only on input block (i, j) -> safe alias;
        # removes a second B*S*D HBM allocation (copy-free when x is donated).
        input_output_aliases={0: 0},
        compiler_params=pltpu.CompilerParams(
            dimension_semantics=("parallel", "parallel"),
            vmem_limit_bytes=40 << 20,
        ),
    )(x_flat, pe_flat)

    return out_flat.reshape(B, S, D)


if __name__ == "__main__":
    # Shapes consistent with the module's slicing: broadcasting the
    # (maxseq_len, S) slice against (B, S, D) requires maxseq_len == S == D.
    model_dim = 16
    maxseq_len = 16
    dropout_rate = 0.1  # unused at inference (identity)
    B, S, D = 2, maxseq_len, model_dim

    key = jax.random.PRNGKey(0)
    x = jax.random.normal(key, (B, S, D), dtype=jnp.float32)

    pos_emb = get_sinusoid_encoding_table(maxseq_len, model_dim)

    # Reference (plain JAX, identical to the PyTorch forward in eval mode),
    # computed before the kernel call.
    ref = x + pos_emb[:, :S]

    out = a_pos_emb_forward(x, pos_emb)
    out = jax.block_until_ready(out)

    assert out.shape == ref.shape and out.dtype == ref.dtype
    np.testing.assert_allclose(np.asarray(out), np.asarray(ref), rtol=1e-6, atol=1e-6)

    print("KERNEL_OK")
</pallas_src>

<mosaic_0001>
module attributes {stable_mosaic.version = 11 : i64} {
  func.func @_add_pos_emb_kernel(%arg0: i32, %arg1: i32, %arg2: memref<2x256xf32, #tpu.memory_space<vmem>>, %arg3: memref<1x256xf32, #tpu.memory_space<vmem>>, %arg4: memref<2x256xf32, #tpu.memory_space<vmem>>) attributes {dimension_semantics = [#tpu.dimension_semantics<parallel>, #tpu.dimension_semantics<parallel>], iteration_bounds = array<i64: 1, 1>, scalar_prefetch = 0 : i64, scratch_operands = 0 : i64, tpu.core_type = #tpu.core_type<tc>, window_params = [{transform_indices = @transform_0, window_bounds = array<i64: 2, 256>}, {transform_indices = @transform_1, window_bounds = array<i64: 1, 256>}, {transform_indices = @transform_2, window_bounds = array<i64: 2, 256>}]} {
    %c0 = arith.constant 0 : index
    %c0_0 = arith.constant 0 : index
    %0 = vector.load %arg2[%c0, %c0_0] : memref<2x256xf32, #tpu.memory_space<vmem>>, vector<2x256xf32>
    %c0_1 = arith.constant 0 : index
    %c0_2 = arith.constant 0 : index
    %1 = vector.load %arg3[%c0_1, %c0_2] : memref<1x256xf32, #tpu.memory_space<vmem>>, vector<1x256xf32>
    %2 = vector.broadcast %1 : vector<1x256xf32> to vector<2x256xf32>
    %3 = arith.addf %0, %2 : vector<2x256xf32>
    %c0_3 = arith.constant 0 : index
    %c0_4 = arith.constant 0 : index
    %4 = vector.load %arg4[%c0_3, %c0_4] : memref<2x256xf32, #tpu.memory_space<vmem>>, vector<2x256xf32>
    tpu.vector_store %arg4[%c0_3, %c0_4], %3 {strides = array<i32>} : memref<2x256xf32, #tpu.memory_space<vmem>>, vector<2x256xf32>,
    return
  }
  func.func @transform_0(%arg0: i32, %arg1: i32) -> (i32, i32) {
    %c0_i32 = arith.constant 0 : i32
    return %arg1, %arg0 : i32, i32
  }
  func.func @transform_1(%arg0: i32, %arg1: i32) -> (i32, i32) {
    %c0_i32 = arith.constant 0 : i32
    %c0_i32_0 = arith.constant 0 : i32
    return %c0_i32, %arg0 : i32, i32
  }
  func.func @transform_2(%arg0: i32, %arg1: i32) -> (i32, i32) {
    %c0_i32 = arith.constant 0 : i32
    return %arg1, %arg0 : i32, i32
  }
}

</mosaic_0001>

<bundles_post_ra>
// kernel: tpu_custom_call.1
= control target key start
LH: loop header
LB: loop body
LE: loop exit
PB: predicated region body
PF: predicated region fallthrough
CT: control target
= control target key end

     0   :  { %7 = vsyncpa [#allocation3], 0  ;;  %s157_s0 = inlined_call_operand.hbm [shape: f32[2,256], index: 0, kind: input, shape index: {}, may-alias: {0,2}]   ;;  %s158_s1 = inlined_call_operand.vmem [shape: f32[1,256], index: 1, kind: input, shape index: {}]   ;;  %s159_s2 = inlined_call_operand.hbm [shape: f32[2,256], index: 2, kind: output, shape index: {}, may-alias: {0,2}]  }
   0x1   :  { %8 = vsyncpa [#allocation4], 0  ;;  %s112_s9 = smov [#allocation2]   ;;  %s64_s13 = scalar_lea.hbm %s157_s0, 64 }
   0x2   :  { %s15_s10 = sshll.u32 %s112_s9, 4  ;;  %p65_p0 = scmp.ne.s32.totalorder %s157_s0, %s64_s13  ;;  %s16_s10 = int_to_ptr.vmem [resolvable:$true] %s15_s10 }
   0x3   :  { %p68_p1 = scmp.lt.u32.totalorder %s64_s13, %s157_s0 }
   0x5   :  { %p70_p2 = pnand %p68_p1, %p65_p0 }
   0x7   :  { %73 = shalt.err (!%p70_p2)
}
   0x8   :  { %s74_s18 = scalar_lea.vmem %s16_s10, 64  ;;  %p79_p4 = scmp.lt.s32.totalorder %s16_s10, %s16_s10 }
   0x9   :  { %p75_p3 = scmp.ne.s32.totalorder %s16_s10, %s74_s18  ;;  %p80_p5 = scmp.lt.s32.totalorder %s74_s18, %s74_s18 }
   0xb   :  { %p81_p6 = por %p80_p5, %p79_p4 }
   0xd   :  { %p82_p7 = pnand %p81_p6, %p75_p3 }
   0xf   :  { %85 = shalt.err (!%p82_p7)
}
  0x10   :  { %18 = dma.hbm_to_vmem [thread:$0]  %s157_s0, 64, %s16_s10, [#allocation3]  }
  0x11   :  { %108 = dma.done.wait [#allocation3], 64  }
  0x12   :  { %109 = vsyncadd [#allocation3], 4294967232  ;;  %v27_v0 = vlaneseq  ;;  %v113_v1 = vmov 1983009808   ;;  %v25_v7 = vld [vmem:[%s158_s1] sm:$0x3] }
  0x13   :  { %v37_v2 = vunpack.c.l.s4 %v113_v1  ;;  %v24_v12 = vld [vmem:[#allocation2] sm:$0xf]  ;;  %s114_s23 = smov [#allocation5]  }
  0x14   :  { %v28_v3 = vshrl.u32 %v27_v0, 7  ;;  %s52_s0 = sshll.u32 %s114_s23, 4  ;;  %s53_s0 = int_to_ptr.vmem [resolvable:$true] %s52_s0 }
  0x15   :  { %v38_v6 = vunpack.c.0.s8 %v37_v2  ;;  %s86_s24 = scalar_lea.vmem %s53_s0, 64  ;;  %p91_p9 = scmp.lt.s32.totalorder %s53_s0, %s53_s0 }
  0x16   :  { %v29_v4 = vsub.s32 0, %v28_v3  ;;  %v33_v5 = vsub.s32 1, %v28_v3  ;;  %p87_p8 = scmp.ne.s32.totalorder %s53_s0, %s86_s24  ;;  %p92_p10 = scmp.lt.s32.totalorder %s86_s24, %s86_s24 }
  0x17   :  { %v41_v10 = vsub.s32 %v38_v6, %v28_v3 }
  0x18   :  { %v30_v8 = vrot.slane %v25_v7, %v29_v4  ;;  %v34_v9 = vrot.slane %v25_v7, %v33_v5  ;;  %p93_p11 = por %p92_p10, %p91_p9 }
  0x1a   :  { %v35_v11 = vcombine.low %v30_v8, %v34_v9  ;;  %p94_p12 = pnand %p93_p11, %p87_p8 }
  0x1c   :  { %v42_v13 = vrot.slane %v35_v11, %v41_v10 }
  0x1e   :  { %v44_v14 = vadd.f32 %v42_v13, %v24_v12 }
  0x20   :  { %45 = vst [vmem:[#allocation5] sm:$0xf] %v44_v14 }
  0x21   :  { %97 = shalt.err (!%p94_p12)
}
  0x22   :  { %s98_s26 = scalar_lea.hbm %s159_s2, 64 }
  0x23   :  { %p99_p13 = scmp.ne.s32.totalorder %s159_s2, %s98_s26  ;;  %p102_p0 = scmp.lt.u32.totalorder %s98_s26, %s159_s2 }
  0x25   :  { %p104_p1 = pnand %p102_p0, %p99_p13 }
  0x27   :  { %107 = shalt.err (!%p104_p1)
}
  0x28   :  { %55 = dma.vmem_to_hbm [thread:$0]  %s53_s0, 64, %s159_s2, [#allocation4]  }
  0x29   :  { %110 = dma.done.wait [#allocation4], 64  }
  0x2a   :  { %111 = vsyncadd [#allocation4], 4294967232 }
  0x2b   :  { %59 = vsyncpa [#allocation3], 1 }
  0x2c   :  { %60 = vsyncpa [#allocation4], 1 }

</bundles_post_ra>
